<compile_context>
chip_gen: v7x
topology: tpu7x:2x2x1
jax: 0.10.0
libtpu: 0.0.40
codegen_flags: <defaults>
</compile_context>

<pallas_src>
import jax
import jax.numpy as jnp
from jax import lax
from jax.experimental import pallas as pl
from jax.experimental.pallas import tpu as pltpu

_NEG_BIG = -1.0e30          # finite "-inf" used for class padding and m init
_LOGITS_BUF_CAP = 12 << 20  # per-buffer cap for the logits tile (double-buffered)
_CLASS_TILE = 2048          # class-tile width for the huge-vocab path


def _cdiv(a, b):
    return (a + b - 1) // b


def _round_up(x, m):
    return ((x + m - 1) // m) * m


def _vmem_per_core_bytes():
    """Per-TensorCore VMEM budget; clamp any chip-level figure to 64 MiB (v7x)."""
    cap = 64 << 20
    try:
        v = getattr(pltpu.get_tpu_info(), "vmem_capacity_bytes", None)
        if v:
            cap = min(int(v), 64 << 20)
    except Exception:
        pass
    return cap


def _ce_kernel_single(logits_ref, labels_ref, out_ref):
    """One class tile covers the whole vocabulary: direct logsumexp, no scratch."""
    x = logits_ref[...].astype(jnp.float32)          # (TR, N)
    lbl = labels_ref[...]                            # (TR, 1) int32

    m = jnp.max(x, axis=-1, keepdims=True)
    l = jnp.sum(jnp.exp(x - m), axis=-1, keepdims=True)
    lse = m + jnp.log(l)

    # gold-class logit gather via lane-iota compare (no MXU / one-hot matmul)
    col = lax.broadcasted_iota(jnp.int32, x.shape, 1)
    g = jnp.sum(jnp.where(col == lbl, x, 0.0), axis=-1, keepdims=True)

    # rows past R (partial boundary tile) carry label -1 -> masked here
    contrib = jnp.where(lbl >= 0, lse - g, 0.0)
    s = jnp.sum(contrib)

    # write the tile sum into a single element of the lane-dense output block;
    # host side does one dense jnp.sum (exact, no strided gather)
    first = ((lax.broadcasted_iota(jnp.int32, out_ref.shape, 1) == 0)
             & (lax.broadcasted_iota(jnp.int32, out_ref.shape, 2) == 0))
    out_ref[...] = jnp.where(first, s, 0.0)


def _make_ce_kernel_multi(n_classes, c_tile):
    """Huge-vocab path: online (flash-style) logsumexp over class tiles."""
    mask_classes = (n_classes % c_tile) != 0

    def kernel(logits_ref, labels_ref, out_ref, m_scr, l_scr, g_scr):
        j = pl.program_id(1)                          # class-tile index (inner)

        @pl.when(j == 0)
        def _():
            m_scr[...] = jnp.full_like(m_scr, _NEG_BIG)
            l_scr[...] = jnp.zeros_like(l_scr)
            g_scr[...] = jnp.zeros_like(g_scr)

        x = logits_ref[...].astype(jnp.float32)       # (TR, C_TILE)
        lbl = labels_ref[...]                         # (TR, 1) int32
        col = lax.broadcasted_iota(jnp.int32, x.shape, 1)

        if mask_classes:
            # partial last class tile: kill out-of-range columns before max/exp
            x = jnp.where(col < (n_classes - j * c_tile), x, _NEG_BIG)

        m_blk = jnp.max(x, axis=-1, keepdims=True)
        m_new = jnp.maximum(m_scr[...], m_blk)
        alpha = jnp.exp(m_scr[...] - m_new)
        l_scr[...] = alpha * l_scr[...] + jnp.sum(jnp.exp(x - m_new),
                                                  axis=-1, keepdims=True)
        m_scr[...] = m_new

        # gather: shift the (TR,1) label instead of the (TR,C_TILE) iota
        rel = lbl - j * c_tile
        g_scr[...] += jnp.sum(jnp.where(col == rel, x, 0.0),
                              axis=-1, keepdims=True)

        @pl.when(j == pl.num_programs(1) - 1)
        def _():
            lse = m_scr[...] + jnp.log(l_scr[...])
            contrib = jnp.where(lbl >= 0, lse - g_scr[...], 0.0)
            s = jnp.sum(contrib)
            first = ((lax.broadcasted_iota(jnp.int32, out_ref.shape, 1) == 0)
                     & (lax.broadcasted_iota(jnp.int32, out_ref.shape, 2) == 0))
            out_ref[...] = jnp.where(first, s, 0.0)

    return kernel


def cross_entropy_loss(logits, labels):
    """logits: (B, T, N) float; labels: (B, T) int -> scalar mean CE loss.

    Labels < 0 are treated as ignored (covers PyTorch's ignore_index=-100 and
    the rows added by internal label padding); the mean divides by the valid
    count.  If every label is ignored the result is NaN (0/0), matching
    PyTorch's mean reduction with all rows ignored.
    """
    B, T, N = logits.shape
    R = B * T
    x = logits.reshape(R, N)                  # free reshape; never padded/copied
    lbl = labels.reshape(R).astype(jnp.int32)

    itemsize = jnp.dtype(x.dtype).itemsize
    row_min = 16 if itemsize == 2 else 8      # bf16 native sublane tile is 16

    # Class tiling: full rows if a minimal-height tile fits the per-buffer cap;
    # otherwise 128-aligned class chunks + online logsumexp recurrence.
    single = row_min * N * itemsize <= _LOGITS_BUF_CAP
    if single:
        c_tile = N
        num_cls_tiles = 1
    else:
        c_tile = _CLASS_TILE
        num_cls_tiles = _cdiv(N, c_tile)

    # Row tile: fill the per-buffer byte cap, stay a multiple of row_min, never
    # exceed the row count, and keep >= 2 row tiles whenever possible so the
    # "parallel" row axis can occupy both TensorCores on v7x.
    if R <= row_min:
        tr = R                                # block == full row extent
    else:
        tr = _LOGITS_BUF_CAP // (c_tile * itemsize)
        tr = max(row_min, (tr // row_min) * row_min)
        tr = min(tr, 4096, _round_up(R, row_min))
        tr = min(tr, _round_up(_cdiv(R, 2), row_min))   # >= 2 row tiles
    num_row_tiles = _cdiv(R, tr)
    r_pad = num_row_tiles * tr

    # Only the tiny label vector is padded (-1 marks rows past R as ignored);
    # the logits matrix is consumed in place with partial boundary tiles.
    lbl_pad = jnp.pad(lbl, (0, r_pad - R), constant_values=-1).reshape(r_pad, 1)

    # VMEM accounting with the 128-lane padding of every narrow (tr,1) buffer.
    resident = (2 * tr * c_tile * itemsize          # double-buffered logits tile
                + 2 * tr * 128 * 4                  # double-buffered labels tile
                + (0 if single else 3 * tr * 128 * 4)   # m / l / gold scratch
                + 2 * 8 * 128 * 4)                  # double-buffered output tile
    vmem_limit = int(min(_vmem_per_core_bytes() * 0.85,
                         max(resident + (8 << 20), 32 << 20)))

    if single:
        kernel = _ce_kernel_single
        grid = (num_row_tiles,)
        in_specs = [pl.BlockSpec((tr, c_tile), lambda i: (i, 0)),   # logits
                    pl.BlockSpec((tr, 1), lambda i: (i, 0))]        # labels
        out_specs = pl.BlockSpec((1, 8, 128), lambda i: (i, 0, 0))
        scratch = []
        dim_sem = ("parallel",)
    else:
        kernel = _make_ce_kernel_multi(N, c_tile)
        grid = (num_row_tiles, num_cls_tiles)
        in_specs = [pl.BlockSpec((tr, c_tile), lambda i, j: (i, j)),
                    pl.BlockSpec((tr, 1), lambda i, j: (i, 0))]
        out_specs = pl.BlockSpec((1, 8, 128), lambda i, j: (i, 0, 0))
        scratch = [pltpu.VMEM((tr, 1), jnp.float32),   # running max m
                   pltpu.VMEM((tr, 1), jnp.float32),   # running sum l
                   pltpu.VMEM((tr, 1), jnp.float32)]   # gold-class logit
        dim_sem = ("parallel", "arbitrary")

    sums = pl.pallas_call(
        kernel,
        out_shape=jax.ShapeDtypeStruct((num_row_tiles, 8, 128), jnp.float32),
        grid_spec=pltpu.PrefetchScalarGridSpec(
            num_scalar_prefetch=0,
            grid=grid,
            in_specs=in_specs,
            out_specs=out_specs,
            scratch_shapes=scratch,
        ),
        compiler_params=pltpu.CompilerParams(
            dimension_semantics=dim_sem,
            vmem_limit_bytes=vmem_limit,
        ),
    )(x, lbl_pad)

    total = jnp.sum(sums)                               # dense sum, no stride
    count = jnp.sum((lbl >= 0).astype(jnp.float32))     # true (unpadded) divisor
    return total / count


if __name__ == "__main__":
    # small shapes consistent with forward(): logits (B, T, N_classes), gt (B, T)
    B, T, N_CLASSES = 2, 8, 32
    key = jax.random.PRNGKey(0)
    k_logits, k_labels = jax.random.split(key)
    logits = jax.random.normal(k_logits, (B, T, N_CLASSES), dtype=jnp.float32)
    labels = jax.random.randint(k_labels, (B, T), 0, N_CLASSES, dtype=jnp.int32)

    loss = jax.block_until_ready(cross_entropy_loss(logits, labels))

    # pure-JAX reference (same math as nn.CrossEntropyLoss, mean reduction)
    x = logits.reshape(B * T, N_CLASSES).astype(jnp.float32)
    g = labels.reshape(B * T)
    ref = jnp.mean(
        jax.nn.logsumexp(x, axis=-1) - jnp.take_along_axis(x, g[:, None], 1)[:, 0]
    )
    assert jnp.allclose(loss, ref, rtol=1e-5, atol=1e-5), (loss, ref)

    # second check: ragged row count exercises the partial-boundary-tile path
    B2, T2, N2 = 3, 5, 40
    k3, k4 = jax.random.split(k_labels)
    logits2 = jax.random.normal(k3, (B2, T2, N2), dtype=jnp.float32)
    labels2 = jax.random.randint(k4, (B2, T2), 0, N2, dtype=jnp.int32)
    loss2 = jax.block_until_ready(cross_entropy_loss(logits2, labels2))
    x2 = logits2.reshape(B2 * T2, N2).astype(jnp.float32)
    g2 = labels2.reshape(B2 * T2)
    ref2 = jnp.mean(
        jax.nn.logsumexp(x2, axis=-1) - jnp.take_along_axis(x2, g2[:, None], 1)[:, 0]
    )
    assert jnp.allclose(loss2, ref2, rtol=1e-5, atol=1e-5), (loss2, ref2)

    # TODO(synk): SumAgg().add('loss_val', ...) is host-side metric logging; no kernel equivalent.
    print("KERNEL_OK")
</pallas_src>

<mosaic_0001>
module attributes {stable_mosaic.version = 11 : i64} {
  func.func @_ce_kernel_single(%arg0: i32, %arg1: memref<8x32xf32, #tpu.memory_space<vmem>>, %arg2: memref<8x1xi32, #tpu.memory_space<vmem>>, %arg3: memref<1x8x128xf32, #tpu.memory_space<vmem>>) attributes {dimension_semantics = [#tpu.dimension_semantics<parallel>], iteration_bounds = array<i64: 2>, scalar_prefetch = 0 : i64, scratch_operands = 0 : i64, tpu.core_type = #tpu.core_type<tc>, window_params = [{transform_indices = @transform_0, window_bounds = array<i64: 8, 32>}, {transform_indices = @transform_1, window_bounds = array<i64: 8, 1>}, {transform_indices = @transform_2, window_bounds = array<i64: 1, 8, 128>}]} {
    %c0 = arith.constant 0 : index
    %c0_0 = arith.constant 0 : index
    %0 = vector.load %arg1[%c0, %c0_0] : memref<8x32xf32, #tpu.memory_space<vmem>>, vector<8x32xf32>
    %c0_1 = arith.constant 0 : index
    %c0_2 = arith.constant 0 : index
    %1 = vector.load %arg2[%c0_1, %c0_2] : memref<8x1xi32, #tpu.memory_space<vmem>>, vector<8x1xi32>
    %cst = arith.constant dense<0xFF800000> : vector<8xf32>
    %2 = vector.multi_reduction <maximumf>, %0, %cst [1] : vector<8x32xf32> to vector<8xf32>
    %3 = vector.shape_cast %2 : vector<8xf32> to vector<8x1xf32>
    %4 = vector.broadcast %3 : vector<8x1xf32> to vector<8x32xf32>
    %5 = arith.subf %0, %4 : vector<8x32xf32>
    %6 = math.exp %5 : vector<8x32xf32>
    %cst_3 = arith.constant dense<0.000000e+00> : vector<8xf32>
    %7 = vector.multi_reduction <add>, %6, %cst_3 [1] : vector<8x32xf32> to vector<8xf32>
    %8 = vector.shape_cast %7 : vector<8xf32> to vector<8x1xf32>
    %9 = math.log %8 : vector<8x1xf32>
    %10 = arith.addf %3, %9 : vector<8x1xf32>
    %11 = tpu.iota {dimensions = array<i32: 1>} : vector<8x32xi32>
    %12 = vector.broadcast %1 : vector<8x1xi32> to vector<8x32xi32>
    %13 = arith.cmpi eq, %11, %12 : vector<8x32xi32>
    %cst_4 = arith.constant 0.000000e+00 : f32
    %14 = vector.broadcast %cst_4 : f32 to vector<8x32xf32>
    %15 = arith.select %13, %0, %14 : vector<8x32xi1>, vector<8x32xf32>
    %cst_5 = arith.constant dense<0.000000e+00> : vector<8xf32>
    %16 = vector.multi_reduction <add>, %15, %cst_5 [1] : vector<8x32xf32> to vector<8xf32>
    %17 = vector.shape_cast %16 : vector<8xf32> to vector<8x1xf32>
    %c0_i32 = arith.constant 0 : i32
    %18 = vector.broadcast %c0_i32 : i32 to vector<8x1xi32>
    %19 = arith.cmpi sge, %1, %18 : vector<8x1xi32>
    %20 = arith.subf %10, %17 : vector<8x1xf32>
    %cst_6 = arith.constant 0.000000e+00 : f32
    %21 = vector.broadcast %cst_6 : f32 to vector<8x1xf32>
    %22 = arith.select %19, %20, %21 : vector<8x1xi1>, vector<8x1xf32>
    %23 = vector.shape_cast %22 : vector<8x1xf32> to vector<1x8x1xf32>
    %cst_7 = arith.constant dense<0.000000e+00> : vector<1xf32>
    %24 = vector.multi_reduction <add>, %23, %cst_7 [1, 2] : vector<1x8x1xf32> to vector<1xf32>
    %25 = vector.shape_cast %24 : vector<1xf32> to vector<1x1x1xf32>
    %26 = vector.extract %25[0, 0, 0] : f32 from vector<1x1x1xf32>
    %27 = tpu.iota {dimensions = array<i32: 1>} : vector<1x8x128xi32>
    %c0_i32_8 = arith.constant 0 : i32
    %28 = vector.broadcast %c0_i32_8 : i32 to vector<1x8x128xi32>
    %29 = arith.cmpi eq, %27, %28 : vector<1x8x128xi32>
    %30 = tpu.iota {dimensions = array<i32: 2>} : vector<1x8x128xi32>
    %c0_i32_9 = arith.constant 0 : i32
    %31 = vector.broadcast %c0_i32_9 : i32 to vector<1x8x128xi32>
    %32 = arith.cmpi eq, %30, %31 : vector<1x8x128xi32>
    %33 = arith.andi %29, %32 : vector<1x8x128xi1>
    %cst_10 = arith.constant 0.000000e+00 : f32
    %34 = vector.broadcast %26 : f32 to vector<1x8x128xf32>
    %35 = vector.broadcast %cst_10 : f32 to vector<1x8x128xf32>
    %36 = arith.select %33, %34, %35 : vector<1x8x128xi1>, vector<1x8x128xf32>
    %c0_11 = arith.constant 0 : index
    %c0_12 = arith.constant 0 : index
    %c0_13 = arith.constant 0 : index
    %37 = vector.load %arg3[%c0_11, %c0_12, %c0_13] : memref<1x8x128xf32, #tpu.memory_space<vmem>>, vector<1x8x128xf32>
    tpu.vector_store %arg3[%c0_11, %c0_12, %c0_13], %36 {strides = array<i32>} : memref<1x8x128xf32, #tpu.memory_space<vmem>>, vector<1x8x128xf32>,
    return
  }
  func.func @transform_0(%arg0: i32) -> (i32, i32) {
    %c0_i32 = arith.constant 0 : i32
    %c0_i32_0 = arith.constant 0 : i32
    return %arg0, %c0_i32 : i32, i32
  }
  func.func @transform_1(%arg0: i32) -> (i32, i32) {
    %c0_i32 = arith.constant 0 : i32
    %c0_i32_0 = arith.constant 0 : i32
    return %arg0, %c0_i32 : i32, i32
  }
  func.func @transform_2(%arg0: i32) -> (i32, i32, i32) {
    %c0_i32 = arith.constant 0 : i32
    %c0_i32_0 = arith.constant 0 : i32
    %c0_i32_1 = arith.constant 0 : i32
    return %arg0, %c0_i32, %c0_i32_0 : i32, i32, i32
  }
}

</mosaic_0001>

<bundles_post_ra>
// kernel: tpu_custom_call.1
= control target key start
LH: loop header
LB: loop body
LE: loop exit
PB: predicated region body
PF: predicated region fallthrough
CT: control target
= control target key end

     0   :  { %7 = vsyncpa [#allocation3], 0  ;;  %s533_s0 = inlined_call_operand.vmem [shape: f32[16,32], index: 0, kind: input, shape index: {}]   ;;  %s534_s1 = inlined_call_operand.vmem [shape: s32[16,1], index: 1, kind: input, shape index: {}]   ;;  %s535_s2 = inlined_call_operand.hbm [shape: f32[2,8,128], index: 2, kind: output, shape index: {}]  }
   0x1   :  { %9 = vsyncpa [#allocation3 + $0x1], 0  ;;  %s427_s9 = smov 0   ;;  %s429_s10 = smov 0  }
   0x2   :  { %s431_s11 = smov 0   ;;  %s433_s12 = smov 0  }
   0x3 LB: > { %s448_s13 = sadd.s32 4294967295, %s408_s12   ;;  %s288_s14 = sadd.s32 4294967294, %s408_s12   ;;  %s408_s12 = sphi %s433_s12, %s541_s12   ;;  %s404_s11 = sphi %s431_s11, %s540_s11   ;;  %s400_s10 = sphi %s429_s10, %s539_s10   ;;  %s396_s9 = sphi %s427_s9, %s538_s9  }
   0x4   : > { %s452_s15 = sadd.s32 1, %s408_s12   ;;  %s74_s16 = sadd.s32 1, %s404_s11 }
   0x5   : > { %s71_s17 = ssub.s32 %s408_s12, %s452_s15  ;;  %p84_p0 = scmp.ne.s32.totalorder %s404_s11, %s400_s10 }
   0x6   : > { %p72_p1 = scmp.eq.s32.totalorder %s71_s17, 0  ;;  %p85_p2 = scmp.eq.s32.totalorder %s448_s13, 1 }
   0x7   : > { %p90_p3 = scmp.ne.s32.totalorder %s400_s10, %s396_s9  ;;  %p91_p4 = scmp.eq.s32.totalorder %s288_s14, 1 }
   0x8   : > { %s463_s18 = scalar_select %p72_p1, %s404_s11, %s74_s16  }
   0x9   : > { %p465_p5 = por %p85_p2, %p84_p0  ;;  %p469_p6 = por %p91_p4, %p90_p3 }
   0xa   : > { %p291_p7 = scmp.ge.s32.totalorder %s408_s12, 1  ;;  %p123_p8 = scmp.lt.s32.totalorder %s408_s12, 3 }
   0xc   : > { %p124_p9 = pnand %p291_p7, %p123_p8 }
   0xd   : > { %p148_p10 = scmp.lt.s32.totalorder (!%p124_p9), %s448_s13, 1  ;;  %v410_v0 = vmov (!%p124_p9), 0   ;;  %vm158_vm0 = vcmask (!%p124_p9), 261120   ;;  %v171_v7 = vlaneseq (!%p124_p9)  ;;  %vm184_vm3 = vcmask (!%p124_p9), 7168   ;;  %s145_s29 = sand.u32 (!%p124_p9), 1, %s400_s10  }
   0xe   : > { %127 = sbr.rel (%p124_p9) target bundleno = 566 (0x236), region = 28  ;;  %341 = vset.pattern.permute.xlu0 (!%p124_p9), %v410_v0  ;;  %s292_s30 = sshll.u32 (!%p124_p9), %s145_s29, 3 }
   0xf   : > { %v172_v8 = vand.u32 (!%p124_p9), 127, %v171_v7  ;;  %v196_v29 = vshrl.u32 (!%p124_p9), %v171_v7, 7  ;;  %s296_s3 = sshll.u32 (!%p124_p9), %s448_s13, 7  ;;  %s147_s4 = scalar_lea.vmem (!%p124_p9), [#allocation2], %s292_s30 }
  0x10   : > { %s217_s5 = sshll.u32 (!%p124_p9), %s147_s4, 4  ;;  %s491_s14 = scalar_lea.hbm (!%p124_p9), %s535_s2, %s296_s3  ;;  %s493_s5 = int_to_ptr.vmem [resolvable:$true] %s217_s5 }
  0x11   : > { %vm197_vm4 = vcmp.eq.s32.totalorder (!%p124_p9), %v196_v29, 0  ;;  %vm198_vm5 = vcmp.eq.s32.totalorder (!%p124_p9), %v172_v8, 0  ;;  %s204_s16 = scalar_lea.sflag (!%p124_p9), [#allocation3], %s145_s29  ;;  %s346_s17 = scalar_lea.vmem (!%p124_p9), %s493_s5, 128 }
  0x12   : > { %vm199_vm6 = vmand (!%p124_p9), %vm197_vm4, %vm198_vm5  ;;  %p347_p11 = scmp.ne.s32.totalorder (!%p124_p9), %s493_s5, %s346_s17 }
  0x14   : > { %p348_p12 = pnand (!%p124_p9), %p347_p11, %p465_p5 }
  0x15   : > { %s149_s21 = scalar_select %p148_p10, %s448_s13, 1 }
  0x16   : > { %p349_p13 = pneg %p348_p12  ;;  %s411_s13 = smov [#allocation2]  }
  0x17   : > { %s293_s22 = sshll.u32 %s149_s21, 3  ;;  %s350_s21 = sshll.u32 %s411_s13, 4  ;;  %s351_s21 = int_to_ptr.vmem [resolvable:$false] %s350_s21 }
  0x18   : > { %s151_s25 = scalar_lea.vmem %s533_s0, %s293_s22  ;;  %s155_s28 = scalar_lea.vmem %s534_s1, %s293_s22 }
  0x19   : > { %v156_v1 = vld [vmem:[%s151_s25] sm:$0xff]  ;;  %s352_s22 = scalar_lea.vmem %s351_s21, 256  ;;  %p353_p0 = scmp.lt.s32.totalorder %s493_s5, %s351_s21 }
  0x1a   : > { %v159_v2 = vsel %vm158_vm0, %v156_v1, -inf  ;;  %v157_v3 = vld [vmem:[%s155_s28] sm:$0xff]  ;;  %p354_p1 = scmp.lt.s32.totalorder %s352_s22, %s346_s17 }
  0x1b   : > { %160 = vmax.xlane.f32.xlu0 %v159_v2  ;;  %vm181_vm2 = vcmp.ge.s32.totalorder %v157_v3, 0 }
  0x1c   : > { %p355_p2 = por %p354_p1, %p353_p0 }
  0x1e   : > { %p356_p3 = pnand %p355_p2, %p349_p13 }
  0x31   : > { %174 = vperm.xlu0 %341, %v157_v3  }
  0xa8   : > { %v161_v4 = vpop.xlane.xlu0 %160 }
  0xa9   : > { %v162_v5 = vsub.f32 %v156_v1, %v161_v4 }
  0xab   : > { %v163_v6 = vmul.f32 1.442695, %v162_v5 }
  0xad   : > { %342 = vpow2.f32 %v163_v6 }
  0xb0   : > { %v175_v9 = vpop.permute.xlu0 %174 }
  0xb1   : > { %vm176_vm1 = vcmp.eq.s32.totalorder %v172_v8, %v175_v9 }
  0xb2   : > { %v177_v11 = vsel %vm176_vm1, %v156_v1, 0.0 }
  0xb3   : > { %v178_v13 = vsel %vm158_vm0, %v177_v11, 0.0 }
  0xb7   : > { %v343_v10 = vpop.eup %342 }
  0xb8   : > { %v165_v12 = vsel %vm158_vm0, %v343_v10, 0.0 }
  0xb9   : > { %166 = vadd.xlane.f32.xlu1 %v165_v12 }
  0xbd   : > { %179 = vadd.xlane.f32.xlu1 %v178_v13 }
 0x146   : > { %v167_v14 = vpop.xlane.xlu1 %166 }
 0x147   : > { %344 = vlog2.f32 %v167_v14 }
 0x14a   : > { %v180_v17 = vpop.xlane.xlu1 %179 }
 0x151   : > { %v345_v15 = vpop.eup %344 }
 0x152   : > { %v169_v16 = vmul.f32 0.6931472, %v345_v15 }
 0x154   : > { %v170_v18 = vadd.f32 %v169_v16, %v161_v4 }
 0x156   : > { %v182_v19 = vsub.f32 %v170_v18, %v180_v17 }
 0x158   : > { %v183_v20 = vsel %vm181_vm2, %v182_v19, 0.0 }
 0x159   : > { %v185_v21 = vsel %vm184_vm3, %v183_v20, 0.0 }
 0x15a   : > { %186 = vadd.xlane.f32.xlu1 %v185_v21 }
 0x1e7   : > { %v187_v22 = vpop.xlane.xlu1 %186 }
 0x1e8   : > { %v188_v23 = vrot.slane %v187_v22, 4 }
 0x1ea   : > { %v189_v24 = vadd.f32 %v188_v23, %v187_v22 }
 0x1ec   : > { %v190_v25 = vrot.slane %v189_v24, 2 }
 0x1ee   : > { %v191_v26 = vadd.f32 %v190_v25, %v189_v24 }
 0x1f0   : > { %v192_v27 = vrot.slane %v191_v26, 1 }
 0x1f2   : > { %v193_v28 = vadd.f32 %v192_v27, %v191_v26 }
 0x1f4   : > { %299 = vpush %v193_v28 }
 0x225   : > { %s300_s6 = spop %299 }
 0x226   : > { %v200_v30 = vstv %s300_s6 }
 0x227   : > { %v201_v31 = vsel %vm199_vm6, %v200_v30, 0.0 }
 0x228   : > { %202 = vst [vmem:[%s147_s4] sm:$0xff] %v201_v31 }
 0x229   : > { %359 = shalt.err (!%p356_p3)
}
 0x22a   : > { %s360_s23 = scalar_lea.hbm %s491_s14, 128  ;;  %s364_s26 = scalar_lea.hbm %s535_s2, 256 }
 0x22b   : > { %p361_p4 = scmp.ne.s32.totalorder %s491_s14, %s360_s23  ;;  %p365_p9 = scmp.lt.u32.totalorder %s491_s14, %s535_s2 }
 0x22c   : > { %p366_p10 = scmp.lt.u32.totalorder %s364_s26, %s360_s23  ;;  %p368_p12 = scmp.lt.u32.totalorder %s360_s23, %s491_s14 }
 0x22d   : > { %p362_p7 = pnand %p361_p4, %p465_p5 }
 0x22e   : > { %p367_p11 = por %p366_p10, %p365_p9 }
 0x22f   : > { %p363_p8 = pneg %p362_p7 }
 0x230   : > { %p369_p13 = por %p368_p12, %p367_p11 }
 0x232   : > { %p370_p0 = pnand %p369_p13, %p363_p8 }
 0x234   : > { %373 = shalt.err (!%p370_p0)
}
 0x235   : > { %301 = dma.vmem_to_hbm [thread:$0]  (%p465_p5), %s493_s5, 128, %s491_s14, %s204_s16  }
 0x236 PF: > { %p307_p1 = scmp.ge.s32.totalorder %s408_s12, 2  ;;  %s229_s29 = sand.u32 1, %s396_s9  }
 0x237   : > { %s230_s30 = scalar_lea.sflag [#allocation3], %s229_s29 }
 0x238   : > { %p304_p2 = pnand %p307_p1, %p469_p6 }
 0x23a   : > { %391 = dma.done.wait (!%p304_p2), %s230_s30, 128  }
 0x23b   : > { %393 = vsyncadd (!%p304_p2), %s230_s30, 4294967168  ;;  %p12_p3 = scmp.ge.s32.totalorder %s452_s15, 4   ;;  %s538_s9 = smov %s400_s10 }
 0x23c   : > { %s539_s10 = smov %s404_s11  ;;  %s540_s11 = smov %s463_s18 }
 0x23d   : > { %s541_s12 = smov %s452_s15  ;;  %14 = sbr.rel (!%p12_p3) target bundleno = 3 (0x3), region = 66 }
 0x244   :  { %235 = vsyncpa [#allocation3], 1 }
 0x245   :  { %237 = vsyncpa [#allocation3 + $0x1], 1 }

</bundles_post_ra>
